<compile_context>
chip_gen: v7x
topology: tpu7x:2x2x1
jax: 0.10.0
libtpu: 0.0.40
codegen_flags: <defaults>
</compile_context>

<pallas_src>
import jax
import jax.numpy as jnp
from jax import lax
from jax.experimental import pallas as pl
from jax.experimental.pallas import tpu as pltpu

VOCAB = 39
SEQ = 50
DMODEL = 32
SEQS_PER_TILE = 8          # 8 * 50 = 400 rows per grid step


def pos_embed_kernel(x_ref, embed_ref, pe_ref, o_ref):
    # x_ref:    (tm, 1)  int32 token ids for this row tile
    # embed_ref:(V, D)   f32 embedding table (resident across all grid steps)
    # pe_ref:   (tm, D)  f32 positional encodings, pre-tiled to the row tile
    # o_ref:    (tm, D)  f32 output tile
    ids = x_ref[...]                                            # (tm, 1)
    tm = ids.shape[0]
    V = embed_ref.shape[0]

    vocab_iota = lax.broadcasted_iota(jnp.int32, (tm, V), 1)    # (tm, V)
    onehot = (ids == vocab_iota).astype(jnp.float32)            # (tm, V)

    # Embedding gather as one-hot matmul on the MXU; f32 keeps exact selection.
    emb = jnp.dot(onehot, embed_ref[...],
                  preferred_element_type=jnp.float32)           # (tm, D)
    o_ref[...] = (emb + pe_ref[...]).astype(o_ref.dtype)


def positional_embedding(x, embed_w, pe, *, seqs_per_tile=SEQS_PER_TILE):
    B, S = x.shape
    V, D = embed_w.shape
    assert pe.shape == (S, D), "pe must be (50, 32); PE requires seq length 50"

    # Pad batch so every grid step covers whole sequences (id 0 is a valid token;
    # the padded rows are dropped after the call).
    Bp = -(-B // seqs_per_tile) * seqs_per_tile
    if Bp != B:
        x = jnp.pad(x, ((0, Bp - B), (0, 0)))

    rows = Bp * S
    tm = seqs_per_tile * S                        # 400 rows / step, multiple of 8

    x_rows = x.reshape(rows, 1)                   # wrapper-side reshape (free)
    pe_tile = jnp.tile(pe, (seqs_per_tile, 1))    # (tm, D), resident in VMEM

    out = pl.pallas_call(
        pos_embed_kernel,
        out_shape=jax.ShapeDtypeStruct((rows, D), jnp.float32),
        grid=(rows // tm,),
        in_specs=[
            pl.BlockSpec((tm, 1), lambda i: (i, 0)),   # row tile of token ids
            pl.BlockSpec((V, D), lambda i: (0, 0)),    # embed table, resident
            pl.BlockSpec((tm, D), lambda i: (0, 0)),   # tiled pe, resident
        ],
        out_specs=pl.BlockSpec((tm, D), lambda i: (i, 0)),
        compiler_params=pltpu.CompilerParams(
            dimension_semantics=("parallel",)),
    )(x_rows, embed_w, pe_tile)

    return out.reshape(Bp, S, D)[:B]


def make_pe():
    # pe[pos, i] = sin(pos / 10000**(i/32)) if i % 2 == 0 else cos(pos / 10000**(i/32))
    # (Matches the reference util.py exactly: raw dim index i for both sin and cos,
    #  and no sqrt(d_model) scaling of the embedding.)
    pos = jnp.arange(SEQ, dtype=jnp.float32)[:, None]           # (50, 1)
    i = jnp.arange(DMODEL, dtype=jnp.float32)[None, :]          # (1, 32)
    angle = pos / (10000.0 ** (i / DMODEL))                     # (50, 32)
    even_mask = (jnp.arange(DMODEL)[None, :] % 2 == 0)
    return jnp.where(even_mask, jnp.sin(angle), jnp.cos(angle)).astype(jnp.float32)


if __name__ == "__main__":
    key = jax.random.PRNGKey(0)
    k_w, k_x1, k_x2 = jax.random.split(key, 3)

    # Deterministic parameter init: embedding weight ~ N(0, 0.1)
    embed_w = (0.1 * jax.random.normal(k_w, (VOCAB, DMODEL))).astype(jnp.float32)
    pe = make_pe()

    # TODO(synk): torch.nn.Embedding raises on out-of-range ids; the one-hot matmul
    # silently yields a zero embedding instead (ids here are always in range).

    # Small spec-consistent case: batch=2, seq=50 (single grid step after padding).
    x_small = jax.random.randint(k_x1, (2, SEQ), 0, VOCAB, dtype=jnp.int32)
    out_small = jax.block_until_ready(positional_embedding(x_small, embed_w, pe))
    ref_small = embed_w[x_small] + pe[None, :, :]
    assert out_small.shape == (2, SEQ, DMODEL)
    assert jnp.allclose(out_small, ref_small, atol=1e-5, rtol=1e-5)

    # Larger batch to exercise the multi-step, software-pipelined row grid.
    x_big = jax.random.randint(k_x2, (16, SEQ), 0, VOCAB, dtype=jnp.int32)
    out_big = jax.block_until_ready(positional_embedding(x_big, embed_w, pe))
    ref_big = embed_w[x_big] + pe[None, :, :]
    assert out_big.shape == (16, SEQ, DMODEL)
    assert jnp.allclose(out_big, ref_big, atol=1e-5, rtol=1e-5)

    print("KERNEL_OK")
</pallas_src>

<mosaic_0001>
module attributes {stable_mosaic.version = 11 : i64} {
  func.func @pos_embed_kernel(%arg0: i32, %arg1: memref<400x1xi32, #tpu.memory_space<vmem>>, %arg2: memref<39x32xf32, #tpu.memory_space<vmem>>, %arg3: memref<400x32xf32, #tpu.memory_space<vmem>>, %arg4: memref<400x32xf32, #tpu.memory_space<vmem>>) attributes {dimension_semantics = [#tpu.dimension_semantics<parallel>], iteration_bounds = array<i64: 1>, scalar_prefetch = 0 : i64, scratch_operands = 0 : i64, tpu.core_type = #tpu.core_type<tc>, window_params = [{transform_indices = @transform_0, window_bounds = array<i64: 400, 1>}, {pipeline_mode = #tpu.pipeline_mode<synchronous>, transform_indices = @transform_1, window_bounds = array<i64: 39, 32>}, {pipeline_mode = #tpu.pipeline_mode<synchronous>, transform_indices = @transform_2, window_bounds = array<i64: 400, 32>}, {transform_indices = @transform_3, window_bounds = array<i64: 400, 32>}]} {
    %c0 = arith.constant 0 : index
    %c0_0 = arith.constant 0 : index
    %0 = vector.load %arg1[%c0, %c0_0] : memref<400x1xi32, #tpu.memory_space<vmem>>, vector<400x1xi32>
    %1 = tpu.iota {dimensions = array<i32: 1>} : vector<400x39xi32>
    %2 = vector.broadcast %0 : vector<400x1xi32> to vector<400x39xi32>
    %3 = arith.cmpi eq, %2, %1 : vector<400x39xi32>
    %4 = arith.extui %3 : vector<400x39xi1> to vector<400x39xi32>
    %5 = arith.sitofp %4 : vector<400x39xi32> to vector<400x39xf32>
    %c0_1 = arith.constant 0 : index
    %c0_2 = arith.constant 0 : index
    %6 = vector.load %arg2[%c0_1, %c0_2] : memref<39x32xf32, #tpu.memory_space<vmem>>, vector<39x32xf32>
    %cst = arith.constant dense<0.000000e+00> : vector<400x32xf32>
    %7 = tpu.matmul %5, %6, %cst {dimension_numbers = #tpu.dot_dimension_numbers<[1], [0], [0], [1], [0, 0, 1, 1], [], []>} : vector<400x39xf32>, vector<39x32xf32>, vector<400x32xf32> -> vector<400x32xf32>
    %c0_3 = arith.constant 0 : index
    %c0_4 = arith.constant 0 : index
    %8 = vector.load %arg3[%c0_3, %c0_4] : memref<400x32xf32, #tpu.memory_space<vmem>>, vector<400x32xf32>
    %9 = arith.addf %7, %8 : vector<400x32xf32>
    %c0_5 = arith.constant 0 : index
    %c0_6 = arith.constant 0 : index
    %10 = vector.load %arg4[%c0_5, %c0_6] : memref<400x32xf32, #tpu.memory_space<vmem>>, vector<400x32xf32>
    tpu.vector_store %arg4[%c0_5, %c0_6], %9 {strides = array<i32>} : memref<400x32xf32, #tpu.memory_space<vmem>>, vector<400x32xf32>,
    return
  }
  func.func @transform_0(%arg0: i32) -> (i32, i32) {
    %c0_i32 = arith.constant 0 : i32
    %c0_i32_0 = arith.constant 0 : i32
    return %arg0, %c0_i32 : i32, i32
  }
  func.func @transform_1(%arg0: i32) -> (i32, i32) {
    %c0_i32 = arith.constant 0 : i32
    %c0_i32_0 = arith.constant 0 : i32
    %c0_i32_1 = arith.constant 0 : i32
    return %c0_i32, %c0_i32_0 : i32, i32
  }
  func.func @transform_2(%arg0: i32) -> (i32, i32) {
    %c0_i32 = arith.constant 0 : i32
    %c0_i32_0 = arith.constant 0 : i32
    %c0_i32_1 = arith.constant 0 : i32
    return %c0_i32, %c0_i32_0 : i32, i32
  }
  func.func @transform_3(%arg0: i32) -> (i32, i32) {
    %c0_i32 = arith.constant 0 : i32
    %c0_i32_0 = arith.constant 0 : i32
    return %arg0, %c0_i32 : i32, i32
  }
}

</mosaic_0001>

<bundles_post_ra>
// kernel: tpu_custom_call.1
= control target key start
LH: loop header
LB: loop body
LE: loop exit
PB: predicated region body
PF: predicated region fallthrough
CT: control target
= control target key end

     0   :  { %v1205_v0 = vmov 0   ;;  %vm572_vm0 = vcmask 1046528   ;;  %v64_v58 = vlaneseq  ;;  %vm421_vm1 = vcmask 318464   ;;  %s1894_s0 = inlined_call_operand.vmem [shape: s32[400,1], index: 0, kind: input, shape index: {}]   ;;  %s1895_s1 = inlined_call_operand.vmem [shape: f32[39,32], index: 1, kind: input, shape index: {}]   ;;  %s1896_s2 = inlined_call_operand.vmem [shape: f32[400,32], index: 2, kind: input, shape index: {}]   ;;  %s1897_s3 = inlined_call_operand.vmem [shape: f32[400,32], index: 3, kind: output, shape index: {}]  }
   0x1   :  { %1204 = vset.pattern.permute.xlu1 %v1205_v0  ;;  %1203 = vset.pattern.permute.xlu0 %v1205_v0  ;;  %v16_v1 = vld [vmem:[%s1894_s0 + $0x10] sm:$0xff]  ;;  %v14_v2 = vld [vmem:[%s1894_s0] sm:$0xff]  ;;  %v15_v4 = vld [vmem:[%s1894_s0 + $0x8] sm:$0xff]  ;;  %v1206_v62 = vmov 0.0  }
   0x2   :  { %73 = vperm.xlu1 %1204, %v16_v1   ;;  %67 = vperm.xlu0 %1203, %v14_v2   ;;  %v40_v3 = vld [vmem:[%s1894_s0 + $0xd0] sm:$0xff]  ;;  %v41_v5 = vld [vmem:[%s1894_s0 + $0xd8] sm:$0xff]  ;;  %v42_v7 = vld [vmem:[%s1894_s0 + $0xe0] sm:$0xff]  ;;  %v1392_v59 = vand.u32 127, %v64_v58 }
   0x3   :  { %v17_v6 = vld [vmem:[%s1894_s0 + $0x18] sm:$0xff]  ;;  %v18_v8 = vld [vmem:[%s1894_s0 + $0x20] sm:$0xff]  ;;  %v43_v9 = vld [vmem:[%s1894_s0 + $0xe8] sm:$0xff] }
   0x4   :  { %v19_v10 = vld [vmem:[%s1894_s0 + $0x28] sm:$0xff]  ;;  %v366_v11 = vld [vmem:[%s1895_s1] sm:$0xff]  ;;  %v368_v13 = vld [vmem:[%s1895_s1 + $0x10] sm:$0xff] }
   0x5   :  { %v367_v12 = vld [vmem:[%s1895_s1 + $0x8] sm:$0xff]  ;;  %v369_v14 = vld [vmem:[%s1895_s1 + $0x18] sm:$0xff]  ;;  %v44_v15 = vld [vmem:[%s1894_s0 + $0xf0] sm:$0xff] }
   0x6   :  { %145 = vperm.xlu1 %1204, %v40_v3   ;;  %70 = vperm.xlu0 %1203, %v15_v4   ;;  %v20_v16 = vld [vmem:[%s1894_s0 + $0x30] sm:$0xff]  ;;  %v1187_v17 = vpack.c.bf16 %v367_v12, %v366_v11  ;;  %v1191_v18 = vpack.c.bf16 %v369_v14, %v368_v13  ;;  %v45_v19 = vld [vmem:[%s1894_s0 + $0xf8] sm:$0xff]  ;;  %v370_v21 = vld [vmem:[%s1895_s1 + $0x20] sm:$0x7f] }
   0x7   :  { %v21_v20 = vld [vmem:[%s1894_s0 + $0x38] sm:$0xff]  ;;  %v46_v22 = vld [vmem:[%s1894_s0 + $0x100] sm:$0xff]  ;;  %v47_v24 = vld [vmem:[%s1894_s0 + $0x108] sm:$0xff] }
   0x8   :  { %1188 = vmatprep.subr.bf16.mxu0 %v1187_v17  ;;  %1195 = vmatprep.subr.bf16.mxu1 %v1187_v17  ;;  %v22_v23 = vld [vmem:[%s1894_s0 + $0x40] sm:$0xff]  ;;  %v23_v25 = vld [vmem:[%s1894_s0 + $0x48] sm:$0xff]  ;;  %v48_v26 = vld [vmem:[%s1894_s0 + $0x110] sm:$0xff] }
   0x9   :  { %1190 = vmatpush3.bf16.msra.mxu0 %v1187_v17  ;;  %1198 = vmatpush3.bf16.msra.mxu1 %v1187_v17  ;;  %v24_v27 = vld [vmem:[%s1894_s0 + $0x50] sm:$0xff]  ;;  %v49_v28 = vld [vmem:[%s1894_s0 + $0x118] sm:$0xff]  ;;  %v50_v30 = vld [vmem:[%s1894_s0 + $0x120] sm:$0xff] }
   0xa   :  { %148 = vperm.xlu1 %1204, %v41_v5   ;;  %76 = vperm.xlu0 %1203, %v17_v6   ;;  %v25_v29 = vld [vmem:[%s1894_s0 + $0x58] sm:$0xff]  ;;  %v26_v31 = vld [vmem:[%s1894_s0 + $0x60] sm:$0xff]  ;;  %v51_v32 = vld [vmem:[%s1894_s0 + $0x128] sm:$0xff] }
   0xb   :  { %1192 = vmatprep.subr.bf16.mxu0 %v1191_v18  ;;  %1196 = vmatprep.subr.bf16.mxu1 %v1191_v18  ;;  %v27_v33 = vld [vmem:[%s1894_s0 + $0x68] sm:$0xff]  ;;  %v52_v34 = vld [vmem:[%s1894_s0 + $0x130] sm:$0xff]  ;;  %v53_v36 = vld [vmem:[%s1894_s0 + $0x138] sm:$0xff] }
   0xc   :  { %v28_v35 = vld [vmem:[%s1894_s0 + $0x70] sm:$0xff]  ;;  %v29_v37 = vld [vmem:[%s1894_s0 + $0x78] sm:$0xff]  ;;  %v54_v38 = vld [vmem:[%s1894_s0 + $0x140] sm:$0xff] }
   0xd   :  { %1194 = vmatpush3.bf16.msra.mxu0 %v1191_v18  ;;  %1199 = vmatpush3.bf16.msra.mxu1 %v1191_v18  ;;  %v30_v39 = vld [vmem:[%s1894_s0 + $0x80] sm:$0xff]  ;;  %v55_v40 = vld [vmem:[%s1894_s0 + $0x148] sm:$0xff]  ;;  %v56_v42 = vld [vmem:[%s1894_s0 + $0x150] sm:$0xff] }
   0xe   :  { %151 = vperm.xlu1 %1204, %v42_v7   ;;  %79 = vperm.xlu0 %1203, %v18_v8   ;;  %v31_v41 = vld [vmem:[%s1894_s0 + $0x88] sm:$0xff]  ;;  %v32_v43 = vld [vmem:[%s1894_s0 + $0x90] sm:$0xff]  ;;  %v57_v44 = vld [vmem:[%s1894_s0 + $0x158] sm:$0xff] }
   0xf   :  { %1110 = vmatprep.subr.msk.mxu0 %vm572_vm0, %v370_v21  ;;  %1197 = vmatprep.subr.msk.mxu1 %vm572_vm0, %v370_v21  ;;  %v33_v45 = vld [vmem:[%s1894_s0 + $0x98] sm:$0xff]  ;;  %v58_v46 = vld [vmem:[%s1894_s0 + $0x160] sm:$0xff]  ;;  %v59_v48 = vld [vmem:[%s1894_s0 + $0x168] sm:$0xff] }
  0x10   :  { %v34_v47 = vld [vmem:[%s1894_s0 + $0xa0] sm:$0xff]  ;;  %v35_v49 = vld [vmem:[%s1894_s0 + $0xa8] sm:$0xff]  ;;  %v60_v50 = vld [vmem:[%s1894_s0 + $0x170] sm:$0xff] }
  0x11   :  { %1111 = vmatpush3.msk.msra.mxu0 %vm572_vm0, %v370_v21  ;;  %1200 = vmatpush3.msk.msra.mxu1 %vm572_vm0, %v370_v21  ;;  %v36_v51 = vld [vmem:[%s1894_s0 + $0xb0] sm:$0xff]  ;;  %v61_v52 = vld [vmem:[%s1894_s0 + $0x178] sm:$0xff]  ;;  %v62_v54 = vld [vmem:[%s1894_s0 + $0x180] sm:$0xff] }
  0x12   :  { %154 = vperm.xlu1 %1204, %v43_v9   ;;  %82 = vperm.xlu0 %1203, %v19_v10   ;;  %v37_v53 = vld [vmem:[%s1894_s0 + $0xb8] sm:$0xff]  ;;  %v38_v55 = vld [vmem:[%s1894_s0 + $0xc0] sm:$0xff]  ;;  %v63_v56 = vld [vmem:[%s1894_s0 + $0x188] sm:$0xff] }
  0x13   :  { %v39_v57 = vld [vmem:[%s1894_s0 + $0xc8] sm:$0xff] }
  0x16   :  { %157 = vperm.xlu1 %1204, %v44_v15   ;;  %85 = vperm.xlu0 %1203, %v20_v16  }
  0x1a   :  { %160 = vperm.xlu1 %1204, %v45_v19   ;;  %88 = vperm.xlu0 %1203, %v21_v20  }
  0x1e   :  { %163 = vperm.xlu1 %1204, %v46_v22   ;;  %91 = vperm.xlu0 %1203, %v22_v23  }
  0x22   :  { %166 = vperm.xlu1 %1204, %v47_v24   ;;  %94 = vperm.xlu0 %1203, %v23_v25  }
  0x26   :  { %169 = vperm.xlu1 %1204, %v48_v26   ;;  %97 = vperm.xlu0 %1203, %v24_v27  }
  0x2a   :  { %172 = vperm.xlu1 %1204, %v49_v28   ;;  %100 = vperm.xlu0 %1203, %v25_v29  }
  0x2e   :  { %175 = vperm.xlu1 %1204, %v50_v30   ;;  %103 = vperm.xlu0 %1203, %v26_v31  }
  0x32   :  { %178 = vperm.xlu1 %1204, %v51_v32   ;;  %106 = vperm.xlu0 %1203, %v27_v33  }
  0x36   :  { %181 = vperm.xlu1 %1204, %v52_v34   ;;  %109 = vperm.xlu0 %1203, %v28_v35  }
  0x3a   :  { %184 = vperm.xlu1 %1204, %v53_v36   ;;  %112 = vperm.xlu0 %1203, %v29_v37  }
  0x3e   :  { %187 = vperm.xlu1 %1204, %v54_v38   ;;  %115 = vperm.xlu0 %1203, %v30_v39  }
  0x42   :  { %190 = vperm.xlu1 %1204, %v55_v40   ;;  %118 = vperm.xlu0 %1203, %v31_v41  }
  0x46   :  { %193 = vperm.xlu1 %1204, %v56_v42   ;;  %121 = vperm.xlu0 %1203, %v32_v43  }
  0x4a   :  { %196 = vperm.xlu1 %1204, %v57_v44   ;;  %124 = vperm.xlu0 %1203, %v33_v45  }
  0x4e   :  { %199 = vperm.xlu1 %1204, %v58_v46   ;;  %127 = vperm.xlu0 %1203, %v34_v47  }
  0x52   :  { %202 = vperm.xlu1 %1204, %v59_v48   ;;  %130 = vperm.xlu0 %1203, %v35_v49  }
  0x56   :  { %205 = vperm.xlu1 %1204, %v60_v50   ;;  %133 = vperm.xlu0 %1203, %v36_v51  }
  0x5a   :  { %208 = vperm.xlu1 %1204, %v61_v52   ;;  %136 = vperm.xlu0 %1203, %v37_v53  }
  0x5e   :  { %211 = vperm.xlu1 %1204, %v62_v54   ;;  %139 = vperm.xlu0 %1203, %v38_v55  }
  0x62   :  { %214 = vperm.xlu1 %1204, %v63_v56   ;;  %142 = vperm.xlu0 %1203, %v39_v57  }
  0x81   :  { %v74_v60 = vpop.permute.xlu1 %73  ;;  %v68_v61 = vpop.permute.xlu0 %67 }
  0x82   :  { %vm216_vm2 = vcmp.eq.s32.totalorder %v68_v61, %v1392_v59  ;;  %vm218_vm3 = vcmp.eq.s32.totalorder %v74_v60, %v1392_v59 }
  0x83   :  { %v946_v63 = vsel %vm216_vm2, 1.0, %v1206_v62  ;;  %v948_v4 = vsel %vm218_vm3, 1.0, %v1206_v62 }
  0x84   :  { %1112 = vmatprep.mubr.msk.f32.mxu0 %vm421_vm1, %v946_v63 }
  0x85   :  { %v146_v0 = vpop.permute.xlu1 %145  ;;  %v71_v1 = vpop.permute.xlu0 %70 }
  0x86   :  { %vm242_vm4 = vcmp.eq.s32.totalorder %v146_v0, %v1392_v59  ;;  %vm217_vm5 = vcmp.eq.s32.totalorder %v71_v1, %v1392_v59 }
  0x87   :  { %v947_v2 = vsel %vm217_vm5, 1.0, %v1206_v62  ;;  %v972_v3 = vsel %vm242_vm4, 1.0, %v1206_v62 }
  0x88   :  { %1113 = vmatmul.mubr.msk.f32.vlgmr.msra.gmra.mrb[0].mxu0 %vm421_vm1, %v947_v2  ;;  %1151 = vmatprep.mubr.msk.f32.mxu1 %vm421_vm1, %v972_v3 }
  0x89   :  { %v149_v5 = vpop.permute.xlu1 %148  ;;  %1115 = vmatprep.mubr.msk.f32.mxu0 %vm421_vm1, %v948_v4  ;;  %v77_v6 = vpop.permute.xlu0 %76 }
  0x8a   :  { %vm243_vm6 = vcmp.eq.s32.totalorder %v149_v5, %v1392_v59  ;;  %vm219_vm7 = vcmp.eq.s32.totalorder %v77_v6, %v1392_v59 }
  0x8b   :  { %v973_v7 = vsel %vm243_vm6, 1.0, %v1206_v62  ;;  %v949_v8 = vsel %vm219_vm7, 1.0, %v1206_v62 }
  0x8c   :  { %1116 = vmatmul.mubr.msk.f32.gmra.mrb[2].mxu0 %vm421_vm1, %v949_v8  ;;  %1152 = vmatmul.mubr.msk.f32.vlgmr.msra.gmra.mrb[0].mxu1 %vm421_vm1, %v973_v7 }
  0x8d   :  { %v152_v9 = vpop.permute.xlu1 %151  ;;  %v80_v10 = vpop.permute.xlu0 %79 }
  0x8e   :  { %vm244_vm8 = vcmp.eq.s32.totalorder %v152_v9, %v1392_v59  ;;  %vm220_vm9 = vcmp.eq.s32.totalorder %v80_v10, %v1392_v59 }
  0x8f   :  { %v974_v11 = vsel %vm244_vm8, 1.0, %v1206_v62  ;;  %v950_v12 = vsel %vm220_vm9, 1.0, %v1206_v62 }
  0x90   :  { %1118 = vmatprep.mubr.msk.f32.mxu0 %vm421_vm1, %v950_v12  ;;  %1154 = vmatprep.mubr.msk.f32.mxu1 %vm421_vm1, %v974_v11 }
  0x91   :  { %v155_v13 = vpop.permute.xlu1 %154  ;;  %v83_v14 = vpop.permute.xlu0 %82 }
  0x92   :  { %vm245_vm10 = vcmp.eq.s32.totalorder %v155_v13, %v1392_v59  ;;  %vm221_vm11 = vcmp.eq.s32.totalorder %v83_v14, %v1392_v59 }
  0x93   :  { %v975_v15 = vsel %vm245_vm10, 1.0, %v1206_v62  ;;  %v951_v16 = vsel %vm221_vm11, 1.0, %v1206_v62 }
  0x94   :  { %1119 = vmatmul.mubr.msk.f32.gmra.mrb[4].mxu0 %vm421_vm1, %v951_v16  ;;  %1155 = vmatmul.mubr.msk.f32.gmra.mrb[2].mxu1 %vm421_vm1, %v975_v15 }
  0x95   :  { %v158_v17 = vpop.permute.xlu1 %157  ;;  %v86_v18 = vpop.permute.xlu0 %85 }
  0x96   :  { %vm246_vm12 = vcmp.eq.s32.totalorder %v158_v17, %v1392_v59  ;;  %vm222_vm13 = vcmp.eq.s32.totalorder %v86_v18, %v1392_v59 }
  0x97   :  { %v976_v19 = vsel %vm246_vm12, 1.0, %v1206_v62  ;;  %v952_v20 = vsel %vm222_vm13, 1.0, %v1206_v62 }
  0x98   :  { %1121 = vmatprep.mubr.msk.f32.mxu0 %vm421_vm1, %v952_v20  ;;  %1157 = vmatprep.mubr.msk.f32.mxu1 %vm421_vm1, %v976_v19 }
  0x99   :  { %v161_v21 = vpop.permute.xlu1 %160  ;;  %v89_v22 = vpop.permute.xlu0 %88 }
  0x9a   :  { %vm247_vm14 = vcmp.eq.s32.totalorder %v161_v21, %v1392_v59  ;;  %vm223_vm15 = vcmp.eq.s32.totalorder %v89_v22, %v1392_v59 }
  0x9b   :  { %v977_v23 = vsel %vm247_vm14, 1.0, %v1206_v62  ;;  %v953_v24 = vsel %vm223_vm15, 1.0, %v1206_v62 }
  0x9c   :  { %1122 = vmatmul.mubr.msk.f32.gmra.mrb[6].mxu0 %vm421_vm1, %v953_v24  ;;  %1158 = vmatmul.mubr.msk.f32.gmra.mrb[4].mxu1 %vm421_vm1, %v977_v23 }
  0x9d   :  { %v164_v25 = vpop.permute.xlu1 %163  ;;  %v92_v26 = vpop.permute.xlu0 %91 }
  0x9e   :  { %vm248_vm0 = vcmp.eq.s32.totalorder %v164_v25, %v1392_v59  ;;  %vm224_vm2 = vcmp.eq.s32.totalorder %v92_v26, %v1392_v59 }
  0x9f   :  { %v978_v27 = vsel %vm248_vm0, 1.0, %v1206_v62  ;;  %v954_v28 = vsel %vm224_vm2, 1.0, %v1206_v62 }
  0xa0   :  { %1124 = vmatprep.mubr.msk.f32.mxu0 %vm421_vm1, %v954_v28  ;;  %1160 = vmatprep.mubr.msk.f32.mxu1 %vm421_vm1, %v978_v27 }
  0xa1   :  { %v167_v29 = vpop.permute.xlu1 %166  ;;  %v95_v30 = vpop.permute.xlu0 %94 }
  0xa2   :  { %vm249_vm3 = vcmp.eq.s32.totalorder %v167_v29, %v1392_v59  ;;  %vm225_vm4 = vcmp.eq.s32.totalorder %v95_v30, %v1392_v59 }
  0xa3   :  { %v979_v31 = vsel %vm249_vm3, 1.0, %v1206_v62  ;;  %v955_v32 = vsel %vm225_vm4, 1.0, %v1206_v62 }
  0xa4   :  { %1125 = vmatmul.mubr.msk.f32.gmra.mrb[8].mxu0 %vm421_vm1, %v955_v32  ;;  %1161 = vmatmul.mubr.msk.f32.gmra.mrb[6].mxu1 %vm421_vm1, %v979_v31 }
  0xa5   :  { %v170_v33 = vpop.permute.xlu1 %169  ;;  %v98_v34 = vpop.permute.xlu0 %97 }
  0xa6   :  { %vm250_vm5 = vcmp.eq.s32.totalorder %v170_v33, %v1392_v59  ;;  %vm226_vm6 = vcmp.eq.s32.totalorder %v98_v34, %v1392_v59 }
  0xa7   :  { %v980_v35 = vsel %vm250_vm5, 1.0, %v1206_v62  ;;  %v956_v36 = vsel %vm226_vm6, 1.0, %v1206_v62 }
  0xa8   :  { %1127 = vmatprep.mubr.msk.f32.mxu0 %vm421_vm1, %v956_v36  ;;  %1163 = vmatprep.mubr.msk.f32.mxu1 %vm421_vm1, %v980_v35  ;;  %v372_v35 = vld [vmem:[%s1896_s2 + $0x8] sm:$0xff]  ;;  %v371_v36 = vld [vmem:[%s1896_s2] sm:$0xff] }
  0xa9   :  { %v173_v37 = vpop.permute.xlu1 %172  ;;  %v101_v38 = vpop.permute.xlu0 %100 }
  0xaa   :  { %vm251_vm7 = vcmp.eq.s32.totalorder %v173_v37, %v1392_v59  ;;  %vm227_vm8 = vcmp.eq.s32.totalorder %v101_v38, %v1392_v59 }
  0xab   :  { %v981_v39 = vsel %vm251_vm7, 1.0, %v1206_v62  ;;  %v957_v40 = vsel %vm227_vm8, 1.0, %v1206_v62 }
  0xac   :  { %1128 = vmatmul.mubr.msk.f32.gmra.mrb[10].mxu0 %vm421_vm1, %v957_v40  ;;  %1164 = vmatmul.mubr.msk.f32.gmra.mrb[8].mxu1 %vm421_vm1, %v981_v39  ;;  %v398_v40 = vld [vmem:[%s1896_s2 + $0xd8] sm:$0xff] }
  0xad   :  { %v176_v41 = vpop.permute.xlu1 %175  ;;  %v104_v42 = vpop.permute.xlu0 %103 }
  0xae   :  { %vm252_vm9 = vcmp.eq.s32.totalorder %v176_v41, %v1392_v59  ;;  %vm228_vm10 = vcmp.eq.s32.totalorder %v104_v42, %v1392_v59  ;;  %v373_v41 = vld [vmem:[%s1896_s2 + $0x10] sm:$0xff] }
  0xaf   :  { %v982_v43 = vsel %vm252_vm9, 1.0, %v1206_v62  ;;  %v958_v44 = vsel %vm228_vm10, 1.0, %v1206_v62  ;;  %v397_v42 = vld [vmem:[%s1896_s2 + $0xd0] sm:$0xff] }
  0xb0   :  { %1130 = vmatprep.mubr.msk.f32.mxu0 %vm421_vm1, %v958_v44  ;;  %1166 = vmatprep.mubr.msk.f32.mxu1 %vm421_vm1, %v982_v43 }
  0xb1   :  { %v179_v45 = vpop.permute.xlu1 %178  ;;  %v107_v46 = vpop.permute.xlu0 %106 }
  0xb2   :  { %vm253_vm11 = vcmp.eq.s32.totalorder %v179_v45, %v1392_v59  ;;  %vm229_vm12 = vcmp.eq.s32.totalorder %v107_v46, %v1392_v59 }
  0xb3   :  { %v983_v47 = vsel %vm253_vm11, 1.0, %v1206_v62  ;;  %v959_v48 = vsel %vm229_vm12, 1.0, %v1206_v62 }
  0xb4   :  { %1131 = vmatmul.mubr.msk.f32.gmra.mrb[12].mxu0 %vm421_vm1, %v959_v48  ;;  %1167 = vmatmul.mubr.msk.f32.gmra.mrb[10].mxu1 %vm421_vm1, %v983_v47 }
  0xb5   :  { %v182_v49 = vpop.permute.xlu1 %181  ;;  %v110_v50 = vpop.permute.xlu0 %109 }
  0xb6   :  { %vm254_vm13 = vcmp.eq.s32.totalorder %v182_v49, %v1392_v59  ;;  %vm230_vm14 = vcmp.eq.s32.totalorder %v110_v50, %v1392_v59 }
  0xb7   :  { %v984_v51 = vsel %vm254_vm13, 1.0, %v1206_v62  ;;  %v960_v52 = vsel %vm230_vm14, 1.0, %v1206_v62 }
  0xb8   :  { %1133 = vmatprep.mubr.msk.f32.mxu0 %vm421_vm1, %v960_v52  ;;  %1169 = vmatprep.mubr.msk.f32.mxu1 %vm421_vm1, %v984_v51  ;;  %v376_v51 = vld [vmem:[%s1896_s2 + $0x28] sm:$0xff] }
  0xb9   :  { %v185_v53 = vpop.permute.xlu1 %184  ;;  %v113_v54 = vpop.permute.xlu0 %112  ;;  %v400_v52 = vld [vmem:[%s1896_s2 + $0xe8] sm:$0xff] }
  0xba   :  { %vm255_vm15 = vcmp.eq.s32.totalorder %v185_v53, %v1392_v59  ;;  %vm231_vm0 = vcmp.eq.s32.totalorder %v113_v54, %v1392_v59  ;;  %v375_v53 = vld [vmem:[%s1896_s2 + $0x20] sm:$0xff] }
  0xbb   :  { %v985_v55 = vsel %vm255_vm15, 1.0, %v1206_v62  ;;  %v961_v56 = vsel %vm231_vm0, 1.0, %v1206_v62  ;;  %v399_v54 = vld [vmem:[%s1896_s2 + $0xe0] sm:$0xff] }
  0xbc   :  { %1134 = vmatmul.mubr.msk.f32.gmra.mrb[14].mxu0 %vm421_vm1, %v961_v56  ;;  %1170 = vmatmul.mubr.msk.f32.gmra.mrb[12].mxu1 %vm421_vm1, %v985_v55 }
  0xbd   :  { %v188_v57 = vpop.permute.xlu1 %187  ;;  %v116_v58 = vpop.permute.xlu0 %115 }
  0xbe   :  { %vm256_vm2 = vcmp.eq.s32.totalorder %v188_v57, %v1392_v59  ;;  %vm232_vm3 = vcmp.eq.s32.totalorder %v116_v58, %v1392_v59 }
  0xbf   :  { %v986_v60 = vsel %vm256_vm2, 1.0, %v1206_v62  ;;  %v962_v61 = vsel %vm232_vm3, 1.0, %v1206_v62 }
  0xc0   :  { %1136 = vmatprep.mubr.msk.f32.mxu0 %vm421_vm1, %v962_v61  ;;  %1172 = vmatprep.mubr.msk.f32.mxu1 %vm421_vm1, %v986_v60 }
  0xc1   :  { %v191_v63 = vpop.permute.xlu1 %190  ;;  %v119_v0 = vpop.permute.xlu0 %118 }
  0xc2   :  { %vm257_vm4 = vcmp.eq.s32.totalorder %v191_v63, %v1392_v59  ;;  %vm233_vm5 = vcmp.eq.s32.totalorder %v119_v0, %v1392_v59 }
  0xc3   :  { %v987_v1 = vsel %vm257_vm4, 1.0, %v1206_v62  ;;  %v963_v2 = vsel %vm233_vm5, 1.0, %v1206_v62 }
  0xc4   :  { %1137 = vmatmul.mubr.msk.f32.gmra.mrb[16].mxu0 %vm421_vm1, %v963_v2  ;;  %1173 = vmatmul.mubr.msk.f32.gmra.mrb[14].mxu1 %vm421_vm1, %v987_v1  ;;  %v378_v1 = vld [vmem:[%s1896_s2 + $0x38] sm:$0xff] }
  0xc5   :  { %v194_v3 = vpop.permute.xlu1 %193  ;;  %v122_v4 = vpop.permute.xlu0 %121  ;;  %v402_v2 = vld [vmem:[%s1896_s2 + $0xf8] sm:$0xff] }
  0xc6   :  { %vm258_vm6 = vcmp.eq.s32.totalorder %v194_v3, %v1392_v59  ;;  %vm234_vm7 = vcmp.eq.s32.totalorder %v122_v4, %v1392_v59  ;;  %v377_v3 = vld [vmem:[%s1896_s2 + $0x30] sm:$0xff] }
  0xc7   :  { %v988_v5 = vsel %vm258_vm6, 1.0, %v1206_v62  ;;  %v964_v6 = vsel %vm234_vm7, 1.0, %v1206_v62  ;;  %vm891_vm7 = vcmask 261120   ;;  %v401_v4 = vld [vmem:[%s1896_s2 + $0xf0] sm:$0xff] }
  0xc8   :  { %1139 = vmatprep.mubr.msk.f32.mxu0 %vm421_vm1, %v964_v6  ;;  %1175 = vmatprep.mubr.msk.f32.mxu1 %vm421_vm1, %v988_v5 }
  0xc9   :  { %v197_v7 = vpop.permute.xlu1 %196  ;;  %v125_v8 = vpop.permute.xlu0 %124 }
  0xca   :  { %vm259_vm8 = vcmp.eq.s32.totalorder %v197_v7, %v1392_v59  ;;  %vm235_vm9 = vcmp.eq.s32.totalorder %v125_v8, %v1392_v59 }
  0xcb   :  { %v989_v9 = vsel %vm259_vm8, 1.0, %v1206_v62  ;;  %v965_v10 = vsel %vm235_vm9, 1.0, %v1206_v62 }
  0xcc   :  { %1140 = vmatmul.mubr.msk.f32.gmra.mrb[18].mxu0 %vm421_vm1, %v965_v10  ;;  %1176 = vmatmul.mubr.msk.f32.gmra.mrb[16].mxu1 %vm421_vm1, %v989_v9 }
  0xcd   :  { %v200_v11 = vpop.permute.xlu1 %199  ;;  %v128_v12 = vpop.permute.xlu0 %127 }
  0xce   :  { %vm260_vm10 = vcmp.eq.s32.totalorder %v200_v11, %v1392_v59  ;;  %vm236_vm11 = vcmp.eq.s32.totalorder %v128_v12, %v1392_v59 }
  0xcf   :  { %v990_v13 = vsel %vm260_vm10, 1.0, %v1206_v62  ;;  %v966_v14 = vsel %vm236_vm11, 1.0, %v1206_v62 }
  0xd0   :  { %1142 = vmatprep.mubr.msk.f32.mxu0 %vm421_vm1, %v966_v14  ;;  %1178 = vmatprep.mubr.msk.f32.mxu1 %vm421_vm1, %v990_v13  ;;  %v380_v13 = vld [vmem:[%s1896_s2 + $0x48] sm:$0xff] }
  0xd1   :  { %v203_v15 = vpop.permute.xlu1 %202  ;;  %v131_v16 = vpop.permute.xlu0 %130  ;;  %v404_v14 = vld [vmem:[%s1896_s2 + $0x108] sm:$0xff] }
  0xd2   :  { %vm261_vm12 = vcmp.eq.s32.totalorder %v203_v15, %v1392_v59  ;;  %vm237_vm13 = vcmp.eq.s32.totalorder %v131_v16, %v1392_v59  ;;  %v379_v15 = vld [vmem:[%s1896_s2 + $0x40] sm:$0xff] }
  0xd3   :  { %v991_v17 = vsel %vm261_vm12, 1.0, %v1206_v62  ;;  %v967_v18 = vsel %vm237_vm13, 1.0, %v1206_v62  ;;  %v403_v16 = vld [vmem:[%s1896_s2 + $0x100] sm:$0xff] }
  0xd4   :  { %1143 = vmatmul.mubr.msk.f32.gmra.mrb[20].mxu0 %vm421_vm1, %v967_v18  ;;  %1179 = vmatmul.mubr.msk.f32.gmra.mrb[18].mxu1 %vm421_vm1, %v991_v17 }
  0xd5   :  { %v206_v19 = vpop.permute.xlu1 %205  ;;  %v134_v20 = vpop.permute.xlu0 %133 }
  0xd6   :  { %vm262_vm14 = vcmp.eq.s32.totalorder %v206_v19, %v1392_v59  ;;  %vm238_vm15 = vcmp.eq.s32.totalorder %v134_v20, %v1392_v59 }
  0xd7   :  { %v992_v21 = vsel %vm262_vm14, 1.0, %v1206_v62  ;;  %v968_v22 = vsel %vm238_vm15, 1.0, %v1206_v62 }
  0xd8   :  { %1145 = vmatprep.mubr.msk.f32.mxu0 %vm421_vm1, %v968_v22  ;;  %1181 = vmatprep.mubr.msk.f32.mxu1 %vm421_vm1, %v992_v21 }
  0xd9   :  { %v209_v23 = vpop.permute.xlu1 %208  ;;  %v137_v24 = vpop.permute.xlu0 %136 }
  0xda   :  { %vm263_vm0 = vcmp.eq.s32.totalorder %v209_v23, %v1392_v59  ;;  %vm239_vm2 = vcmp.eq.s32.totalorder %v137_v24, %v1392_v59 }
  0xdb   :  { %v993_v25 = vsel %vm263_vm0, 1.0, %v1206_v62  ;;  %v969_v26 = vsel %vm239_vm2, 1.0, %v1206_v62 }
  0xdc   :  { %1146 = vmatmul.mubr.msk.f32.gmra.mrb[22].mxu0 %vm421_vm1, %v969_v26  ;;  %1182 = vmatmul.mubr.msk.f32.gmra.mrb[20].mxu1 %vm421_vm1, %v993_v25  ;;  %v382_v25 = vld [vmem:[%s1896_s2 + $0x58] sm:$0xff] }
  0xdd   :  { %v212_v27 = vpop.permute.xlu1 %211  ;;  %v140_v28 = vpop.permute.xlu0 %139  ;;  %v406_v26 = vld [vmem:[%s1896_s2 + $0x118] sm:$0xff] }
  0xde   :  { %vm264_vm3 = vcmp.eq.s32.totalorder %v212_v27, %v1392_v59  ;;  %vm240_vm4 = vcmp.eq.s32.totalorder %v140_v28, %v1392_v59  ;;  %v381_v27 = vld [vmem:[%s1896_s2 + $0x50] sm:$0xff] }
  0xdf   :  { %v994_v29 = vsel %vm264_vm3, 1.0, %v1206_v62  ;;  %v970_v30 = vsel %vm240_vm4, 1.0, %v1206_v62  ;;  %v405_v28 = vld [vmem:[%s1896_s2 + $0x110] sm:$0xff] }
  0xe0   :  { %1148 = vmatprep.mubr.msk.f32.mxu0 %vm421_vm1, %v970_v30  ;;  %1184 = vmatprep.mubr.msk.f32.mxu1 %vm421_vm1, %v994_v29 }
  0xe1   :  { %v215_v31 = vpop.permute.xlu1 %214  ;;  %v143_v32 = vpop.permute.xlu0 %142 }
  0xe2   :  { %vm265_vm5 = vcmp.eq.s32.totalorder %v215_v31, %v1392_v59  ;;  %vm241_vm6 = vcmp.eq.s32.totalorder %v143_v32, %v1392_v59 }
  0xe3   :  { %v995_v33 = vsel %vm265_vm5, 1.0, %v1206_v62  ;;  %v971_v34 = vsel %vm241_vm6, 1.0, %v1206_v62  ;;  %v374_v62 = vld [vmem:[%s1896_s2 + $0x18] sm:$0xff] }
  0xe4   :  { %1149 = vmatmul.mubr.msk.f32.gmra.mrb[24].mxu0 %vm421_vm1, %v971_v34  ;;  %1185 = vmatmul.mubr.msk.f32.gmra.mrb[22].mxu1 %vm421_vm1, %v995_v33 }
 0x15b   :  { %v1114_v37 = vpop.f32.mrb[0].mxu0 }
 0x15c   :  { %v648_v38 = vadd.f32 %v1114_v37, %v372_v35  ;;  %v642_v59 = vpop.f32.mrb[1].mxu0  ;;  %v384_v37 = vld [vmem:[%s1896_s2 + $0x68] sm:$0xff] }
 0x15d   :  { %v643_v39 = vadd.f32 %v642_v59, %v371_v36  ;;  %v383_v59 = vld [vmem:[%s1896_s2 + $0x60] sm:$0xff] }
 0x15e   :  { %893 = vst.msk [vmem:[%s1897_s3 + $0x8] sm:$0xff] %vm891_vm7, %v648_v38  ;;  %v408_v38 = vld [vmem:[%s1896_s2 + $0x128] sm:$0xff] }
 0x15f   :  { %892 = vst.msk [vmem:[%s1897_s3] sm:$0xff] %vm891_vm7, %v643_v39  ;;  %v1117_v43 = vpop.f32.mrb[2].mxu0  ;;  %v1153_v44 = vpop.f32.mrb[0].mxu1  ;;  %v407_v39 = vld [vmem:[%s1896_s2 + $0x120] sm:$0xff] }
 0x160   :  { %v658_v45 = vadd.f32 %v1117_v43, %v374_v62  ;;  %v778_v46 = vadd.f32 %v1153_v44, %v398_v40  ;;  %v652_v47 = vpop.f32.mrb[3].mxu0  ;;  %v772_v48 = vpop.f32.mrb[1].mxu1 }
 0x161   :  { %v653_v49 = vadd.f32 %v652_v47, %v373_v41  ;;  %v773_v50 = vadd.f32 %v772_v48, %v397_v42  ;;  %v386_v47 = vld [vmem:[%s1896_s2 + $0x78] sm:$0xff] }
 0x162   :  { %895 = vst.msk [vmem:[%s1897_s3 + $0x18] sm:$0xff] %vm891_vm7, %v658_v45  ;;  %919 = vst.msk [vmem:[%s1897_s3 + $0xd8] sm:$0xff] %vm891_vm7, %v778_v46  ;;  %v410_v48 = vld [vmem:[%s1896_s2 + $0x138] sm:$0xff] }
 0x163   :  { %894 = vst.msk [vmem:[%s1897_s3 + $0x10] sm:$0xff] %vm891_vm7, %v653_v49  ;;  %918 = vst.msk [vmem:[%s1897_s3 + $0xd0] sm:$0xff] %vm891_vm7, %v773_v50  ;;  %v385_v49 = vld [vmem:[%s1896_s2 + $0x70] sm:$0xff] }
 0x164   :  { %v409_v50 = vld [vmem:[%s1896_s2 + $0x130] sm:$0xff] }
 0x167   :  { %v1120_v55 = vpop.f32.mrb[4].mxu0  ;;  %v1156_v56 = vpop.f32.mrb[2].mxu1 }
 0x168   :  { %v668_v57 = vadd.f32 %v1120_v55, %v376_v51  ;;  %v788_v58 = vadd.f32 %v1156_v56, %v400_v52  ;;  %v662_v60 = vpop.f32.mrb[5].mxu0  ;;  %v782_v61 = vpop.f32.mrb[3].mxu1 }
 0x169   :  { %v663_v63 = vadd.f32 %v662_v60, %v375_v53  ;;  %v783_v0 = vadd.f32 %v782_v61, %v399_v54  ;;  %v388_v60 = vld [vmem:[%s1896_s2 + $0x88] sm:$0xff] }
 0x16a   :  { %897 = vst.msk [vmem:[%s1897_s3 + $0x28] sm:$0xff] %vm891_vm7, %v668_v57  ;;  %921 = vst.msk [vmem:[%s1897_s3 + $0xe8] sm:$0xff] %vm891_vm7, %v788_v58  ;;  %v412_v61 = vld [vmem:[%s1896_s2 + $0x148] sm:$0xff] }
 0x16b   :  { %896 = vst.msk [vmem:[%s1897_s3 + $0x20] sm:$0xff] %vm891_vm7, %v663_v63  ;;  %920 = vst.msk [vmem:[%s1897_s3 + $0xe0] sm:$0xff] %vm891_vm7, %v783_v0  ;;  %v387_v63 = vld [vmem:[%s1896_s2 + $0x80] sm:$0xff] }
 0x16c   :  { %v411_v0 = vld [vmem:[%s1896_s2 + $0x140] sm:$0xff] }
 0x16f   :  { %v1123_v5 = vpop.f32.mrb[6].mxu0  ;;  %v1159_v6 = vpop.f32.mrb[4].mxu1 }
 0x170   :  { %v678_v7 = vadd.f32 %v1123_v5, %v378_v1  ;;  %v798_v8 = vadd.f32 %v1159_v6, %v402_v2  ;;  %v672_v9 = vpop.f32.mrb[7].mxu0  ;;  %v792_v10 = vpop.f32.mrb[5].mxu1 }
 0x171   :  { %v673_v11 = vadd.f32 %v672_v9, %v377_v3  ;;  %v793_v12 = vadd.f32 %v792_v10, %v401_v4  ;;  %v390_v9 = vld [vmem:[%s1896_s2 + $0x98] sm:$0xff] }
 0x172   :  { %899 = vst.msk [vmem:[%s1897_s3 + $0x38] sm:$0xff] %vm891_vm7, %v678_v7  ;;  %923 = vst.msk [vmem:[%s1897_s3 + $0xf8] sm:$0xff] %vm891_vm7, %v798_v8  ;;  %v414_v10 = vld [vmem:[%s1896_s2 + $0x158] sm:$0xff] }
 0x173   :  { %898 = vst.msk [vmem:[%s1897_s3 + $0x30] sm:$0xff] %vm891_vm7, %v673_v11  ;;  %922 = vst.msk [vmem:[%s1897_s3 + $0xf0] sm:$0xff] %vm891_vm7, %v793_v12  ;;  %v389_v11 = vld [vmem:[%s1896_s2 + $0x90] sm:$0xff] }
 0x174   :  { %v413_v12 = vld [vmem:[%s1896_s2 + $0x150] sm:$0xff] }
 0x177   :  { %v1126_v17 = vpop.f32.mrb[8].mxu0  ;;  %v1162_v18 = vpop.f32.mrb[6].mxu1 }
 0x178   :  { %v688_v19 = vadd.f32 %v1126_v17, %v380_v13  ;;  %v808_v20 = vadd.f32 %v1162_v18, %v404_v14  ;;  %v682_v21 = vpop.f32.mrb[9].mxu0  ;;  %v802_v22 = vpop.f32.mrb[7].mxu1 }
 0x179   :  { %v683_v23 = vadd.f32 %v682_v21, %v379_v15  ;;  %v803_v24 = vadd.f32 %v802_v22, %v403_v16  ;;  %v392_v21 = vld [vmem:[%s1896_s2 + $0xa8] sm:$0xff] }
 0x17a   :  { %901 = vst.msk [vmem:[%s1897_s3 + $0x48] sm:$0xff] %vm891_vm7, %v688_v19  ;;  %925 = vst.msk [vmem:[%s1897_s3 + $0x108] sm:$0xff] %vm891_vm7, %v808_v20  ;;  %v416_v22 = vld [vmem:[%s1896_s2 + $0x168] sm:$0xff] }
 0x17b   :  { %900 = vst.msk [vmem:[%s1897_s3 + $0x40] sm:$0xff] %vm891_vm7, %v683_v23  ;;  %924 = vst.msk [vmem:[%s1897_s3 + $0x100] sm:$0xff] %vm891_vm7, %v803_v24  ;;  %v391_v23 = vld [vmem:[%s1896_s2 + $0xa0] sm:$0xff] }
 0x17c   :  { %v415_v24 = vld [vmem:[%s1896_s2 + $0x160] sm:$0xff] }
 0x17f   :  { %v1129_v29 = vpop.f32.mrb[10].mxu0  ;;  %v1165_v30 = vpop.f32.mrb[8].mxu1 }
 0x180   :  { %v698_v31 = vadd.f32 %v1129_v29, %v382_v25  ;;  %v818_v32 = vadd.f32 %v1165_v30, %v406_v26  ;;  %v692_v33 = vpop.f32.mrb[11].mxu0  ;;  %v812_v34 = vpop.f32.mrb[9].mxu1 }
 0x181   :  { %v693_v35 = vadd.f32 %v692_v33, %v381_v27  ;;  %v813_v36 = vadd.f32 %v812_v34, %v405_v28  ;;  %v394_v33 = vld [vmem:[%s1896_s2 + $0xb8] sm:$0xff] }
 0x182   :  { %903 = vst.msk [vmem:[%s1897_s3 + $0x58] sm:$0xff] %vm891_vm7, %v698_v31  ;;  %927 = vst.msk [vmem:[%s1897_s3 + $0x118] sm:$0xff] %vm891_vm7, %v818_v32  ;;  %v418_v34 = vld [vmem:[%s1896_s2 + $0x178] sm:$0xff] }
 0x183   :  { %902 = vst.msk [vmem:[%s1897_s3 + $0x50] sm:$0xff] %vm891_vm7, %v693_v35  ;;  %926 = vst.msk [vmem:[%s1897_s3 + $0x110] sm:$0xff] %vm891_vm7, %v813_v36  ;;  %v393_v35 = vld [vmem:[%s1896_s2 + $0xb0] sm:$0xff] }
 0x184   :  { %v417_v36 = vld [vmem:[%s1896_s2 + $0x170] sm:$0xff] }
 0x187   :  { %v1132_v62 = vpop.f32.mrb[12].mxu0  ;;  %v1168_v40 = vpop.f32.mrb[10].mxu1 }
 0x188   :  { %v708_v41 = vadd.f32 %v1132_v62, %v384_v37  ;;  %v828_v42 = vadd.f32 %v1168_v40, %v408_v38  ;;  %v702_v43 = vpop.f32.mrb[13].mxu0  ;;  %v822_v44 = vpop.f32.mrb[11].mxu1 }
 0x189   :  { %v703_v45 = vadd.f32 %v702_v43, %v383_v59  ;;  %v823_v46 = vadd.f32 %v822_v44, %v407_v39  ;;  %v396_v43 = vld [vmem:[%s1896_s2 + $0xc8] sm:$0xff] }
 0x18a   :  { %905 = vst.msk [vmem:[%s1897_s3 + $0x68] sm:$0xff] %vm891_vm7, %v708_v41  ;;  %929 = vst.msk [vmem:[%s1897_s3 + $0x128] sm:$0xff] %vm891_vm7, %v828_v42  ;;  %v420_v44 = vld [vmem:[%s1896_s2 + $0x188] sm:$0xff] }
 0x18b   :  { %904 = vst.msk [vmem:[%s1897_s3 + $0x60] sm:$0xff] %vm891_vm7, %v703_v45  ;;  %928 = vst.msk [vmem:[%s1897_s3 + $0x120] sm:$0xff] %vm891_vm7, %v823_v46  ;;  %v395_v45 = vld [vmem:[%s1896_s2 + $0xc0] sm:$0xff] }
 0x18c   :  { %v419_v46 = vld [vmem:[%s1896_s2 + $0x180] sm:$0xff] }
 0x18f   :  { %v1135_v51 = vpop.f32.mrb[14].mxu0  ;;  %v1171_v52 = vpop.f32.mrb[12].mxu1 }
 0x190   :  { %v718_v53 = vadd.f32 %v1135_v51, %v386_v47  ;;  %v838_v54 = vadd.f32 %v1171_v52, %v410_v48  ;;  %v712_v55 = vpop.f32.mrb[15].mxu0  ;;  %v832_v56 = vpop.f32.mrb[13].mxu1 }
 0x191   :  { %v713_v57 = vadd.f32 %v712_v55, %v385_v49  ;;  %v833_v58 = vadd.f32 %v832_v56, %v409_v50 }
 0x192   :  { %907 = vst.msk [vmem:[%s1897_s3 + $0x78] sm:$0xff] %vm891_vm7, %v718_v53  ;;  %931 = vst.msk [vmem:[%s1897_s3 + $0x138] sm:$0xff] %vm891_vm7, %v838_v54 }
 0x193   :  { %906 = vst.msk [vmem:[%s1897_s3 + $0x70] sm:$0xff] %vm891_vm7, %v713_v57  ;;  %930 = vst.msk [vmem:[%s1897_s3 + $0x130] sm:$0xff] %vm891_vm7, %v833_v58 }
 0x197   :  { %v1138_v1 = vpop.f32.mrb[16].mxu0  ;;  %v1174_v2 = vpop.f32.mrb[14].mxu1 }
 0x198   :  { %v728_v3 = vadd.f32 %v1138_v1, %v388_v60  ;;  %v848_v4 = vadd.f32 %v1174_v2, %v412_v61  ;;  %v722_v5 = vpop.f32.mrb[17].mxu0  ;;  %v842_v6 = vpop.f32.mrb[15].mxu1 }
 0x199   :  { %v723_v7 = vadd.f32 %v722_v5, %v387_v63  ;;  %v843_v8 = vadd.f32 %v842_v6, %v411_v0 }
 0x19a   :  { %909 = vst.msk [vmem:[%s1897_s3 + $0x88] sm:$0xff] %vm891_vm7, %v728_v3  ;;  %933 = vst.msk [vmem:[%s1897_s3 + $0x148] sm:$0xff] %vm891_vm7, %v848_v4 }
 0x19b   :  { %908 = vst.msk [vmem:[%s1897_s3 + $0x80] sm:$0xff] %vm891_vm7, %v723_v7  ;;  %932 = vst.msk [vmem:[%s1897_s3 + $0x140] sm:$0xff] %vm891_vm7, %v843_v8 }
 0x19f   :  { %v1141_v13 = vpop.f32.mrb[18].mxu0  ;;  %v1177_v14 = vpop.f32.mrb[16].mxu1 }
 0x1a0   :  { %v738_v15 = vadd.f32 %v1141_v13, %v390_v9  ;;  %v858_v16 = vadd.f32 %v1177_v14, %v414_v10  ;;  %v732_v17 = vpop.f32.mrb[19].mxu0  ;;  %v852_v18 = vpop.f32.mrb[17].mxu1 }
 0x1a1   :  { %v733_v19 = vadd.f32 %v732_v17, %v389_v11  ;;  %v853_v20 = vadd.f32 %v852_v18, %v413_v12 }
 0x1a2   :  { %911 = vst.msk [vmem:[%s1897_s3 + $0x98] sm:$0xff] %vm891_vm7, %v738_v15  ;;  %935 = vst.msk [vmem:[%s1897_s3 + $0x158] sm:$0xff] %vm891_vm7, %v858_v16 }
 0x1a3   :  { %910 = vst.msk [vmem:[%s1897_s3 + $0x90] sm:$0xff] %vm891_vm7, %v733_v19  ;;  %934 = vst.msk [vmem:[%s1897_s3 + $0x150] sm:$0xff] %vm891_vm7, %v853_v20 }
 0x1a7   :  { %v1144_v25 = vpop.f32.mrb[20].mxu0  ;;  %v1180_v26 = vpop.f32.mrb[18].mxu1 }
 0x1a8   :  { %v748_v27 = vadd.f32 %v1144_v25, %v392_v21  ;;  %v868_v28 = vadd.f32 %v1180_v26, %v416_v22  ;;  %v742_v29 = vpop.f32.mrb[21].mxu0  ;;  %v862_v30 = vpop.f32.mrb[19].mxu1 }
 0x1a9   :  { %v743_v31 = vadd.f32 %v742_v29, %v391_v23  ;;  %v863_v32 = vadd.f32 %v862_v30, %v415_v24 }
 0x1aa   :  { %913 = vst.msk [vmem:[%s1897_s3 + $0xa8] sm:$0xff] %vm891_vm7, %v748_v27  ;;  %937 = vst.msk [vmem:[%s1897_s3 + $0x168] sm:$0xff] %vm891_vm7, %v868_v28 }
 0x1ab   :  { %912 = vst.msk [vmem:[%s1897_s3 + $0xa0] sm:$0xff] %vm891_vm7, %v743_v31  ;;  %936 = vst.msk [vmem:[%s1897_s3 + $0x160] sm:$0xff] %vm891_vm7, %v863_v32 }
 0x1af   :  { %v1147_v37 = vpop.f32.mrb[22].mxu0  ;;  %v1183_v38 = vpop.f32.mrb[20].mxu1 }
 0x1b0   :  { %v758_v59 = vadd.f32 %v1147_v37, %v394_v33  ;;  %v878_v39 = vadd.f32 %v1183_v38, %v418_v34  ;;  %v752_v62 = vpop.f32.mrb[23].mxu0  ;;  %v872_v40 = vpop.f32.mrb[21].mxu1 }
 0x1b1   :  { %v753_v41 = vadd.f32 %v752_v62, %v393_v35  ;;  %v873_v42 = vadd.f32 %v872_v40, %v417_v36 }
 0x1b2   :  { %915 = vst.msk [vmem:[%s1897_s3 + $0xb8] sm:$0xff] %vm891_vm7, %v758_v59  ;;  %939 = vst.msk [vmem:[%s1897_s3 + $0x178] sm:$0xff] %vm891_vm7, %v878_v39 }
 0x1b3   :  { %914 = vst.msk [vmem:[%s1897_s3 + $0xb0] sm:$0xff] %vm891_vm7, %v753_v41  ;;  %938 = vst.msk [vmem:[%s1897_s3 + $0x170] sm:$0xff] %vm891_vm7, %v873_v42 }
 0x1b7   :  { %v1150_v47 = vpop.f32.mrb[24].mxu0  ;;  %v1186_v48 = vpop.f32.mrb[22].mxu1 }
 0x1b8   :  { %v768_v49 = vadd.f32 %v1150_v47, %v396_v43  ;;  %v888_v50 = vadd.f32 %v1186_v48, %v420_v44  ;;  %v762_v51 = vpop.f32.mrb[25].mxu0  ;;  %v882_v52 = vpop.f32.mrb[23].mxu1 }
 0x1b9   :  { %v763_v53 = vadd.f32 %v762_v51, %v395_v45  ;;  %v883_v54 = vadd.f32 %v882_v52, %v419_v46 }
 0x1ba   :  { %917 = vst.msk [vmem:[%s1897_s3 + $0xc8] sm:$0xff] %vm891_vm7, %v768_v49  ;;  %941 = vst.msk [vmem:[%s1897_s3 + $0x188] sm:$0xff] %vm891_vm7, %v888_v50 }
 0x1bb   :  { %916 = vst.msk [vmem:[%s1897_s3 + $0xc0] sm:$0xff] %vm891_vm7, %v763_v53  ;;  %940 = vst.msk [vmem:[%s1897_s3 + $0x180] sm:$0xff] %vm891_vm7, %v883_v54 }

</bundles_post_ra>
